<compile_context>
chip_gen: v7x
topology: tpu7x:2x2x1
jax: 0.10.0
libtpu: 0.0.40
codegen_flags: <defaults>
</compile_context>

<pallas_src>
import functools

import jax
import jax.numpy as jnp
from jax.experimental import pallas as pl
from jax.experimental.pallas import tpu as pltpu

_SUBLANE = 8  # sublane count of a vreg (second-to-last dim granularity)


def _round_up(n, m):
    return (n + m - 1) // m * m


# ----------------------------------------------------------------------------
# Kernel: one batch tile of the whole MLP head.
#   x_ref  : [TB, ndf]      activations (f32; cast in-register if weights bf16)
#   w1_ref : [ndf, half]    resident weight (transposed PyTorch layout)
#   b1_ref : [1, half]      f32 bias
#   w2_ref : [half, ncls]   resident weight
#   b2_ref : [1, ncls]      f32 bias
#   out_ref: [TB, ncls]     f32 output (real class width, no lane padding)
# ----------------------------------------------------------------------------
def _netC_kernel(x_ref, w1_ref, b1_ref, w2_ref, b2_ref, out_ref):
    # Linear 1 on the MXU, f32 accumulation. The astype is a no-op for the
    # default f32 path and an in-register cast for the bf16 path.
    h = jnp.dot(x_ref[...].astype(w1_ref.dtype), w1_ref[...],
                preferred_element_type=jnp.float32)
    h = h + b1_ref[...]                    # broadcast [1, half] over batch (f32)
    h = jnp.where(h > 0, h, 0.2 * h)       # LeakyReLU(0.2), f32 elementwise
    # Linear 2 -> real nclasses-wide output block.
    o = jnp.dot(h.astype(w2_ref.dtype), w2_ref[...],
                preferred_element_type=jnp.float32)
    out_ref[...] = (o + b2_ref[...]).astype(out_ref.dtype)


# ----------------------------------------------------------------------------
# One-time parameter repacking. Keep OUT of the per-call hot path.
# ----------------------------------------------------------------------------
def prepare_netC_params(w1, b1, w2, b2, compute_dtype=jnp.float32):
    """Repack PyTorch-layout params into kernel layout.

      w1: [ndf//2, ndf]  (nn.Linear.weight: [out, in])
      b1: [ndf//2]
      w2: [nclasses, ndf//2]
      b2: [nclasses]

    compute_dtype: dtype of the matmul weight operands (jnp.float32 default;
      jnp.bfloat16 halves weight HBM traffic and runs at full MXU rate on
      v5e / v6e / v7x — x is cast in-register inside the kernel). Biases stay
      f32 so the elementwise path is f32 on all generations.
    """
    half, ndf = w1.shape
    ncls = w2.shape[0]
    w1t = jnp.asarray(w1.T, dtype=compute_dtype)          # [ndf, half]
    w2t = jnp.asarray(w2.T, dtype=compute_dtype)          # [half, ncls]
    b1r = jnp.asarray(b1, jnp.float32).reshape(1, half)
    b2r = jnp.asarray(b2, jnp.float32).reshape(1, ncls)
    return {"w1t": w1t, "b1r": b1r, "w2t": w2t, "b2r": b2r}


@functools.partial(jax.jit, static_argnames=("block_b",))
def _netC_forward_packed(x, w1t, b1r, w2t, b2r, *, block_b):
    B, ndf = x.shape
    half = w1t.shape[1]
    ncls = w2t.shape[1]

    # --- Batch tile selection (all Python ints; B is static under jit). ---
    block_b = max(_round_up(block_b, _SUBLANE), _SUBLANE)
    nb = pl.cdiv(B, block_b)
    if B >= 2048:
        # Ensure an even number of >=2 grid steps so the "parallel" batch axis
        # can be balanced across both TensorCores on v7x; tiles stay >=1K rows.
        nb = max(nb, 2)
        nb += nb % 2
    tb = _round_up(pl.cdiv(B, nb), _SUBLANE)
    if tb >= B:
        tb = B  # single block covering the full batch (always a legal shape)
    grid = (pl.cdiv(B, tb),)  # last block may be partial; Pallas masks it

    return pl.pallas_call(
        _netC_kernel,
        out_shape=jax.ShapeDtypeStruct((B, ncls), jnp.float32),
        grid=grid,
        in_specs=[
            pl.BlockSpec((tb, ndf), lambda i: (i, 0)),    # batch-tiled activations
            pl.BlockSpec((ndf, half), lambda i: (0, 0)),  # weights / biases stay
            pl.BlockSpec((1, half), lambda i: (0, 0)),    # VMEM-resident across
            pl.BlockSpec((half, ncls), lambda i: (0, 0)), # all grid steps
            pl.BlockSpec((1, ncls), lambda i: (0, 0)),
        ],
        out_specs=pl.BlockSpec((tb, ncls), lambda i: (i, 0)),
        compiler_params=pltpu.CompilerParams(
            dimension_semantics=("parallel",)),           # megacore-friendly
    )(x, w1t, b1r, w2t, b2r)


def netC_forward(x, params, block_b=4096):
    """Forward pass. `params` comes from prepare_netC_params (called once)."""
    return _netC_forward_packed(
        x, params["w1t"], params["b1r"], params["w2t"], params["b2r"],
        block_b=block_b)


def netC_reference(x, w1, b1, w2, b2):
    """Pure-JAX reference matching PyTorch semantics exactly."""
    h = x @ w1.T + b1
    h = jnp.where(h > 0, h, 0.2 * h)
    return h @ w2.T + b2


if __name__ == "__main__":
    # Shapes consistent with the module: opt.ndf = 64, nclasses = 10.
    B, ndf, nclasses = 8, 64, 10
    half = ndf // 2

    key = jax.random.PRNGKey(0)
    kx, kw1, kb1, kw2, kb2 = jax.random.split(key, 5)

    x = jax.random.normal(kx, (B, ndf), dtype=jnp.float32)

    # nn.Linear-style init: U(-1/sqrt(fan_in), 1/sqrt(fan_in))
    lim1 = 1.0 / (ndf ** 0.5)
    w1 = jax.random.uniform(kw1, (half, ndf), minval=-lim1, maxval=lim1,
                            dtype=jnp.float32)
    b1 = jax.random.uniform(kb1, (half,), minval=-lim1, maxval=lim1,
                            dtype=jnp.float32)
    lim2 = 1.0 / (half ** 0.5)
    w2 = jax.random.uniform(kw2, (nclasses, half), minval=-lim2, maxval=lim2,
                            dtype=jnp.float32)
    b2 = jax.random.uniform(kb2, (nclasses,), minval=-lim2, maxval=lim2,
                            dtype=jnp.float32)

    # One-time repack (f32 compute; compute_dtype=jnp.bfloat16 works on
    # v5e / v6e / v7x for halved weight traffic — loosen tolerances then).
    params = prepare_netC_params(w1, b1, w2, b2)

    # Small-batch path: single grid step, block == full batch.
    out = jax.block_until_ready(netC_forward(x, params))
    ref = netC_reference(x, w1, b1, w2, b2)
    assert out.shape == (B, nclasses), out.shape
    assert jnp.allclose(out, ref, atol=1e-5, rtol=1e-5), "mismatch vs reference (B=8)"

    # Larger batch, default tile: B=1000 -> one full 1000-row block, no padding
    # and no post-call slicing anywhere.
    B2 = 1000
    x2 = jax.random.normal(jax.random.PRNGKey(1), (B2, ndf), dtype=jnp.float32)
    out2 = jax.block_until_ready(netC_forward(x2, params))
    ref2 = netC_reference(x2, w1, b1, w2, b2)
    assert out2.shape == (B2, nclasses), out2.shape
    assert jnp.allclose(out2, ref2, atol=1e-4, rtol=1e-4), "mismatch (B=1000)"

    # Multi-step grid with a partial last block (B=1000, block_b=192 ->
    # tb=168, grid=(6,)): exercises the masked edge-block path with no
    # wrapper-side padding of x.
    out3 = jax.block_until_ready(netC_forward(x2, params, block_b=192))
    assert out3.shape == (B2, nclasses), out3.shape
    assert jnp.allclose(out3, ref2, atol=1e-4, rtol=1e-4), "mismatch (partial block)"

    print("KERNEL_OK")
</pallas_src>

<mosaic_0001>
module attributes {stable_mosaic.version = 11 : i64} {
  func.func @_netC_kernel(%arg0: i32, %arg1: memref<8x64xf32, #tpu.memory_space<vmem>>, %arg2: memref<64x32xf32, #tpu.memory_space<vmem>>, %arg3: memref<1x32xf32, #tpu.memory_space<vmem>>, %arg4: memref<32x10xf32, #tpu.memory_space<vmem>>, %arg5: memref<1x10xf32, #tpu.memory_space<vmem>>, %arg6: memref<8x10xf32, #tpu.memory_space<vmem>>) attributes {dimension_semantics = [#tpu.dimension_semantics<parallel>], iteration_bounds = array<i64: 1>, scalar_prefetch = 0 : i64, scratch_operands = 0 : i64, tpu.core_type = #tpu.core_type<tc>, window_params = [{transform_indices = @transform_0, window_bounds = array<i64: 8, 64>}, {pipeline_mode = #tpu.pipeline_mode<synchronous>, transform_indices = @transform_1, window_bounds = array<i64: 64, 32>}, {pipeline_mode = #tpu.pipeline_mode<synchronous>, transform_indices = @transform_2, window_bounds = array<i64: 1, 32>}, {pipeline_mode = #tpu.pipeline_mode<synchronous>, transform_indices = @transform_3, window_bounds = array<i64: 32, 10>}, {pipeline_mode = #tpu.pipeline_mode<synchronous>, transform_indices = @transform_4, window_bounds = array<i64: 1, 10>}, {transform_indices = @transform_5, window_bounds = array<i64: 8, 10>}]} {
    %c0 = arith.constant 0 : index
    %c0_0 = arith.constant 0 : index
    %0 = vector.load %arg1[%c0, %c0_0] : memref<8x64xf32, #tpu.memory_space<vmem>>, vector<8x64xf32>
    %c0_1 = arith.constant 0 : index
    %c0_2 = arith.constant 0 : index
    %1 = vector.load %arg2[%c0_1, %c0_2] : memref<64x32xf32, #tpu.memory_space<vmem>>, vector<64x32xf32>
    %cst = arith.constant dense<0.000000e+00> : vector<8x32xf32>
    %2 = tpu.matmul %0, %1, %cst {dimension_numbers = #tpu.dot_dimension_numbers<[1], [0], [0], [1], [0, 0, 1, 1], [], []>} : vector<8x64xf32>, vector<64x32xf32>, vector<8x32xf32> -> vector<8x32xf32>
    %c0_3 = arith.constant 0 : index
    %c0_4 = arith.constant 0 : index
    %3 = vector.load %arg3[%c0_3, %c0_4] : memref<1x32xf32, #tpu.memory_space<vmem>>, vector<1x32xf32>
    %4 = vector.broadcast %3 : vector<1x32xf32> to vector<8x32xf32>
    %5 = arith.addf %2, %4 : vector<8x32xf32>
    %cst_5 = arith.constant 0.000000e+00 : f32
    %6 = vector.broadcast %cst_5 : f32 to vector<8x32xf32>
    %7 = arith.cmpf ogt, %5, %6 : vector<8x32xf32>
    %cst_6 = arith.constant 2.000000e-01 : f32
    %8 = vector.broadcast %cst_6 : f32 to vector<8x32xf32>
    %9 = arith.mulf %8, %5 : vector<8x32xf32>
    %10 = arith.select %7, %5, %9 : vector<8x32xi1>, vector<8x32xf32>
    %c0_7 = arith.constant 0 : index
    %c0_8 = arith.constant 0 : index
    %11 = vector.load %arg4[%c0_7, %c0_8] : memref<32x10xf32, #tpu.memory_space<vmem>>, vector<32x10xf32>
    %cst_9 = arith.constant dense<0.000000e+00> : vector<8x10xf32>
    %12 = tpu.matmul %10, %11, %cst_9 {dimension_numbers = #tpu.dot_dimension_numbers<[1], [0], [0], [1], [0, 0, 1, 1], [], []>} : vector<8x32xf32>, vector<32x10xf32>, vector<8x10xf32> -> vector<8x10xf32>
    %c0_10 = arith.constant 0 : index
    %c0_11 = arith.constant 0 : index
    %13 = vector.load %arg5[%c0_10, %c0_11] : memref<1x10xf32, #tpu.memory_space<vmem>>, vector<1x10xf32>
    %14 = vector.broadcast %13 : vector<1x10xf32> to vector<8x10xf32>
    %15 = arith.addf %12, %14 : vector<8x10xf32>
    %c0_12 = arith.constant 0 : index
    %c0_13 = arith.constant 0 : index
    %16 = vector.load %arg6[%c0_12, %c0_13] : memref<8x10xf32, #tpu.memory_space<vmem>>, vector<8x10xf32>
    tpu.vector_store %arg6[%c0_12, %c0_13], %15 {strides = array<i32>} : memref<8x10xf32, #tpu.memory_space<vmem>>, vector<8x10xf32>,
    return
  }
  func.func @transform_0(%arg0: i32) -> (i32, i32) {
    %c0_i32 = arith.constant 0 : i32
    %c0_i32_0 = arith.constant 0 : i32
    return %arg0, %c0_i32 : i32, i32
  }
  func.func @transform_1(%arg0: i32) -> (i32, i32) {
    %c0_i32 = arith.constant 0 : i32
    %c0_i32_0 = arith.constant 0 : i32
    %c0_i32_1 = arith.constant 0 : i32
    return %c0_i32, %c0_i32_0 : i32, i32
  }
  func.func @transform_2(%arg0: i32) -> (i32, i32) {
    %c0_i32 = arith.constant 0 : i32
    %c0_i32_0 = arith.constant 0 : i32
    %c0_i32_1 = arith.constant 0 : i32
    return %c0_i32, %c0_i32_0 : i32, i32
  }
  func.func @transform_3(%arg0: i32) -> (i32, i32) {
    %c0_i32 = arith.constant 0 : i32
    %c0_i32_0 = arith.constant 0 : i32
    %c0_i32_1 = arith.constant 0 : i32
    return %c0_i32, %c0_i32_0 : i32, i32
  }
  func.func @transform_4(%arg0: i32) -> (i32, i32) {
    %c0_i32 = arith.constant 0 : i32
    %c0_i32_0 = arith.constant 0 : i32
    %c0_i32_1 = arith.constant 0 : i32
    return %c0_i32, %c0_i32_0 : i32, i32
  }
  func.func @transform_5(%arg0: i32) -> (i32, i32) {
    %c0_i32 = arith.constant 0 : i32
    %c0_i32_0 = arith.constant 0 : i32
    return %arg0, %c0_i32 : i32, i32
  }
}

</mosaic_0001>

<bundles_post_ra>
// kernel: _netC_forward_packed.1
= control target key start
LH: loop header
LB: loop body
LE: loop exit
PB: predicated region body
PF: predicated region fallthrough
CT: control target
= control target key end

     0   :  { %v309_v3 = vmov 0.0|0.0   ;;  %vm310_vm0 = vmmov 0   ;;  %v311_v6 = vmov 0.0   ;;  %s400_s0 = inlined_call_operand.vmem [shape: f32[8,64], index: 0, kind: input, shape index: {}]   ;;  %s401_s1 = inlined_call_operand.vmem [shape: f32[64,32], index: 1, kind: input, shape index: {}]   ;;  %s402_s2 = inlined_call_operand.vmem [shape: f32[1,32], index: 2, kind: input, shape index: {}]   ;;  %s403_s3 = inlined_call_operand.vmem [shape: f32[32,10], index: 3, kind: input, shape index: {}]   ;;  %s404_s4 = inlined_call_operand.vmem [shape: f32[1,10], index: 4, kind: input, shape index: {}]   ;;  %s405_s5 = inlined_call_operand.hbm [shape: f32[8,10], index: 5, kind: output, shape index: {}]  }
   0x1   :  { %v22_v0 = vld [vmem:[%s401_s1] sm:$0xff]  ;;  %v23_v1 = vld [vmem:[%s401_s1 + $0x8] sm:$0xff]  ;;  %v24_v2 = vld [vmem:[%s401_s1 + $0x10] sm:$0xff]  ;;  %263 = vmatprep.subr.bf16.mxu0 %v309_v3  ;;  %249 = vmatprep.mubr.msk.f32.mxu0 %vm310_vm0, %v311_v6 }
   0x2   :  { %v264_v4 = vpack.c.bf16 %v23_v1, %v22_v0  ;;  %v25_v5 = vld [vmem:[%s401_s1 + $0x18] sm:$0xff]  ;;  %275 = vmatprep.subr.bf16.mxu1 %v309_v3  ;;  %260 = vmatprep.mubr.msk.f32.mxu1 %vm310_vm0, %v311_v6  ;;  %v114_v8 = vld [vmem:[%s403_s3] sm:$0xff]  ;;  %v115_v9 = vld [vmem:[%s403_s3 + $0x8] sm:$0xff] }
   0x3   :  { %v267_v7 = vpack.c.bf16 %v25_v5, %v24_v2  ;;  %v26_v10 = vld [vmem:[%s401_s1 + $0x20] sm:$0xff]  ;;  %v27_v11 = vld [vmem:[%s401_s1 + $0x28] sm:$0xff]  ;;  %v276_v12 = vpack.c.bf16 %v115_v9, %v114_v8 }
   0x4   :  { %265 = vmatpush3.bf16.msra.mxu0 %v264_v4 }
   0x5   :  { %266 = vmatprep.subr.bf16.mxu0 %v309_v3 }
   0x6   :  { %10 = vsyncpa [#allocation3], 0  ;;  %277 = vmatpush3.bf16.msra.mxu1 %v276_v12  ;;  %v270_v13 = vpack.c.bf16 %v27_v11, %v26_v10  ;;  %v28_v14 = vld [vmem:[%s401_s1 + $0x30] sm:$0xff]  ;;  %v29_v15 = vld [vmem:[%s401_s1 + $0x38] sm:$0xff]  ;;  %vm37_vm1 = vcmask 523264   ;;  %vm125_vm3 = vcmask 261120  }
   0x7   :  { %278 = vmatprep.subr.bf16.mxu1 %v309_v3  ;;  %v273_v16 = vpack.c.bf16 %v29_v15, %v28_v14  ;;  %v21_v17 = vld [vmem:[%s400_s0] sm:$0xff]  ;;  %v116_v18 = vld [vmem:[%s403_s3 + $0x10] sm:$0xff]  ;;  %v117_v19 = vld [vmem:[%s403_s3 + $0x18] sm:$0xff]  ;;  %s312_s21 = smov [#allocation2]   ;;  %vm199_vm4 = vcmask 80896  }
   0x8   :  { %268 = vmatpush3.bf16.msra.mxu0 %v267_v7  ;;  %v279_v20 = vpack.c.bf16 %v117_v19, %v116_v18  ;;  %v215_v21 = vld [vmem:[%s402_s2] ss:$0 sm:$0xff]  ;;  %s207_s3 = sshll.u32 %s312_s21, 4  ;;  %s208_s3 = int_to_ptr.vmem [resolvable:$true] %s207_s3 }
   0x9   :  { %269 = vmatprep.subr.bf16.mxu0 %v309_v3  ;;  %v217_v27 = vld [vmem:[%s404_s4] ss:$0 sm:$0xff]  ;;  %s285_s2 = scalar_lea.vmem %s208_s3, 128  ;;  %p290_p1 = scmp.lt.s32.totalorder %s208_s3, %s208_s3 }
   0xa   :  { %280 = vmatpush3.bf16.msra.mxu1 %v279_v20  ;;  %p286_p0 = scmp.ne.s32.totalorder %s208_s3, %s285_s2  ;;  %p291_p2 = scmp.lt.s32.totalorder %s285_s2, %s285_s2 }
   0xc   :  { %271 = vmatpush3.bf16.msra.mxu0 %v270_v13  ;;  %p292_p3 = por %p291_p2, %p290_p1 }
   0xd   :  { %272 = vmatprep.subr.bf16.mxu0 %v309_v3 }
   0xe   :  { %p293_p4 = pnand %p292_p3, %p286_p0 }
  0x10   :  { %274 = vmatpush3.bf16.msra.mxu0 %v273_v16 }
  0x13   :  { %250 = vmatmul.mubr.msk.f32.vlgmr.msra.gmra.mrb[0].mxu0 %vm37_vm1, %v21_v17 }
  0xe6   :  { %v107_v22 = vpop.f32.mrb[0].mxu0 }
  0xe7   :  { %v108_v23 = vadd.f32 %v215_v21, %v107_v22  ;;  %v251_v24 = vpop.f32.mrb[1].mxu0 }
  0xe9   :  { %vm111_vm2 = vcmp.gt.f32.partialorder %v108_v23, 0.0  ;;  %v112_v25 = vmul.f32 0.2, %v108_v23 }
  0xeb   :  { %v113_v26 = vsel %vm111_vm2, %v108_v23, %v112_v25 }
  0xec   :  { %261 = vmatmul.mubr.msk.f32.vlgmr.msra.gmra.mrb[0].mxu1 %vm125_vm3, %v113_v26 }
 0x1bf   :  { %v195_v28 = vpop.f32.mrb[0].mxu1 }
 0x1c0   :  { %v196_v29 = vadd.f32 %v217_v27, %v195_v28  ;;  %v262_v30 = vpop.f32.mrb[1].mxu1 }
 0x1c2   :  { %200 = vst.msk [vmem:[#allocation2] sm:$0xff] %vm199_vm4, %v196_v29 }
 0x1c3   :  { %296 = shalt.err (!%p293_p4)
}
 0x1c4   :  { %s297_s24 = scalar_lea.hbm %s405_s5, 128 }
 0x1c5   :  { %p298_p5 = scmp.ne.s32.totalorder %s405_s5, %s297_s24  ;;  %p301_p6 = scmp.lt.u32.totalorder %s297_s24, %s405_s5 }
 0x1c7   :  { %p303_p7 = pnand %p301_p6, %p298_p5 }
 0x1c9   :  { %306 = shalt.err (!%p303_p7)
}
 0x1ca   :  { %210 = dma.vmem_to_hbm [thread:$0]  %s208_s3, 128, %s405_s5, [#allocation3]  }
 0x1cb   :  { %307 = dma.done.wait [#allocation3], 128  }
 0x1cc   :  { %308 = vsyncadd [#allocation3], 4294967168 }
 0x1cd   :  { %214 = vsyncpa [#allocation3], 1 }

</bundles_post_ra>
